<compile_context>
chip_gen: v6e
topology: v6e:2x2x1
jax: 0.10.0
libtpu: 0.0.40
codegen_flags: <defaults>
</compile_context>

<pallas_src>
import functools

import jax
import jax.numpy as jnp
from jax.experimental import pallas as pl
from jax.experimental.pallas import tpu as pltpu


# ---------------------------------------------------------------------------
# Tiling helpers
# ---------------------------------------------------------------------------
def _sublane_mult(dtype):
    """Sublane granularity: 8 for 4-byte, 16 for 2-byte, 32 for 1-byte."""
    return max(8, 32 // jnp.dtype(dtype).itemsize)


def _pick_block(dim, cap, mult, floor):
    """Pick a block size for one axis.

    * dim <= cap: use the full extent (exempt from (8,128) divisibility).
    * otherwise: largest multiple of `mult` in [floor, cap] that divides dim
      exactly (no ragged edge), else `cap` rounded to `mult` (ragged edge is
      handled by a cdiv grid + in-kernel masking / dropped OOB writes).
    """
    if dim <= cap:
        return dim
    cap_b = max((cap // mult) * mult, mult)
    b = cap_b
    lo = max(floor, mult)
    while b >= lo:
        if dim % b == 0:
            return b
        b -= mult
    return cap_b


def _device_defaults():
    """(block_r, block_m, vmem_limit_bytes) tuned per TPU generation."""
    block_r, block_m, vmem_limit = 256, 2048, None      # ~2 MiB f32 tile
    try:
        kind = jax.devices()[0].device_kind.lower()
        if "v7" in kind or "tpu7" in kind:
            # 3.2 TB/s HBM: 4 MiB tiles (~90% roofline); 2x(in)+2x(out)
            # double-buffered = 16 MiB, well under the explicit 32 MiB limit.
            block_m, vmem_limit = 4096, 32 * 1024 * 1024
    except Exception:  # pragma: no cover - conservative fallback
        pass
    return block_r, block_m, vmem_limit


# ---------------------------------------------------------------------------
# Kernel 1: per-row moments (used twice for the data-dependent init).
#   pass 1 (shift = 0):        s1[r] = sum_m x[r, m]
#   pass 2 (shift = bias[c]):  s2[r] = sum_m (x[r, m] + shift[r])^2
# Rows are (n, c) pairs of the NCHW input, so the (N,C)->C combine is a tiny
# wrapper-side reduce.  Output blocks are the accumulators (resident across
# the 'arbitrary' m axis); the row axis is 'parallel'.
# ---------------------------------------------------------------------------
def _row_moments_kernel(x_ref, shift_ref, s1_ref, s2_ref, *, bm, m_total,
                        ragged_m):
    j = pl.program_id(1)

    @pl.when(j == 0)
    def _():
        s1_ref[...] = jnp.zeros_like(s1_ref)
        s2_ref[...] = jnp.zeros_like(s2_ref)

    x = x_ref[...].astype(jnp.float32) + shift_ref[...]        # (br, bm)
    if ragged_m:
        # Mask the out-of-bounds lanes of the last m-block in-kernel instead
        # of padding x in HBM (extra full read+write of a mem-bound pass).
        lane = jax.lax.broadcasted_iota(jnp.int32, x.shape, 1)
        x = jnp.where(j * bm + lane < m_total, x, 0.0)

    s1_ref[...] += jnp.sum(x, axis=-1, keepdims=True)
    s2_ref[...] += jnp.sum(x * x, axis=-1, keepdims=True)


def _row_moments(x2d, shift_r, br, bm, vmem_limit):
    R, M = x2d.shape
    ragged_m = (M % bm) != 0
    kernel = functools.partial(_row_moments_kernel, bm=bm, m_total=M,
                               ragged_m=ragged_m)
    return pl.pallas_call(
        kernel,
        out_shape=(jax.ShapeDtypeStruct((R, 1), jnp.float32),
                   jax.ShapeDtypeStruct((R, 1), jnp.float32)),
        grid_spec=pltpu.PrefetchScalarGridSpec(
            num_scalar_prefetch=0,
            grid=(pl.cdiv(R, br), pl.cdiv(M, bm)),
            in_specs=[pl.BlockSpec((br, bm), lambda i, j: (i, j)),
                      pl.BlockSpec((br, 1), lambda i, j: (i, 0))],
            out_specs=[pl.BlockSpec((br, 1), lambda i, j: (i, 0)),
                       pl.BlockSpec((br, 1), lambda i, j: (i, 0))],
        ),
        compiler_params=pltpu.CompilerParams(
            dimension_semantics=("parallel", "arbitrary"),
            vmem_limit_bytes=vmem_limit),
    )(x2d, shift_r)


def actnorm_init(x, scale=1.0, block_r=None, block_m=None):
    """Data-dependent init (mimics initialize_parameters()).

    x: (N, C, H, W) -> (bias (1,C,1,1), logs (1,C,1,1)), both float32.
      bias = -mean(x, over [N,H,W])
      logs = log(scale / (sqrt(mean((x + bias)^2, over [N,H,W])) + 1e-6))
    Two passes (mean, then centered sum of squares) for numerical safety.
    """
    N, C, H, W = x.shape
    R, M = N * C, H * W
    count = float(N * M)

    dbr, dbm, vmem_limit = _device_defaults()
    block_r = dbr if block_r is None else block_r
    block_m = dbm if block_m is None else block_m

    br = _pick_block(R, block_r, _sublane_mult(x.dtype), floor=64)
    bm = _pick_block(M, block_m, 128, floor=512)

    x2d = x.reshape(R, M)                       # free row-major view of NCHW

    # Pass 1: per-row sums -> per-channel mean -> bias = -mean.
    zero_shift = jnp.zeros((R, 1), jnp.float32)
    s1, _ = _row_moments(x2d, zero_shift, br, bm, vmem_limit)
    mean_c = jnp.sum(s1.reshape(N, C), axis=0) / count
    bias_c = -mean_c

    # Pass 2: per-row centered sum of squares -> per-channel var -> logs.
    shift_r = jnp.tile(bias_c, N).reshape(R, 1)
    _, s2 = _row_moments(x2d, shift_r, br, bm, vmem_limit)
    var_c = jnp.sum(s2.reshape(N, C), axis=0) / count
    logs_c = jnp.log(float(scale) / (jnp.sqrt(var_c) + 1e-6))

    return bias_c.reshape(1, C, 1, 1), logs_c.reshape(1, C, 1, 1)


# ---------------------------------------------------------------------------
# Kernel 2: forward/reverse affine.  Pure per-row FMA; scale/shift and the
# logdet contribution are precomputed per channel in the wrapper.
#   forward:  y = (x + bias) * exp(logs)  ==  x * exp(logs)  + bias*exp(logs)
#   reverse:  y =  x * exp(-logs) - bias  ==  x * exp(-logs) + (-bias)
# ---------------------------------------------------------------------------
def _actnorm_affine_kernel(x_ref, ss_ref, y_ref):
    scale = ss_ref[:, 0:1]                               # (br, 1) f32
    shift = ss_ref[:, 1:2]                               # (br, 1) f32
    x = x_ref[...].astype(jnp.float32)                   # (br, bm)
    y_ref[...] = (x * scale + shift).astype(y_ref.dtype)


def actnorm_forward(x, bias, logs, logdet=None, reverse=False,
                    block_r=None, block_m=None):
    """x: (N, C, H, W); bias/logs: (1, C, 1, 1); logdet: (N,) or None."""
    N, C, H, W = x.shape
    R, M = N * C, H * W

    dbr, dbm, vmem_limit = _device_defaults()
    block_r = dbr if block_r is None else block_r
    block_m = dbm if block_m is None else block_m

    logs_c = logs.reshape(C).astype(jnp.float32)
    bias_c = bias.reshape(C).astype(jnp.float32)
    if not reverse:
        scale_c = jnp.exp(logs_c)
        shift_c = bias_c * scale_c
    else:
        scale_c = jnp.exp(-logs_c)
        shift_c = -bias_c

    # Per-row (row = n*C + c) scale/shift packed into one tiny (R, 2) input.
    ss_r = jnp.stack([jnp.tile(scale_c, N), jnp.tile(shift_c, N)], axis=-1)

    br = _pick_block(R, block_r, _sublane_mult(x.dtype), floor=64)
    bm = _pick_block(M, block_m, 128, floor=512)

    x2d = x.reshape(R, M)                       # free row-major view of NCHW

    y2d = pl.pallas_call(
        _actnorm_affine_kernel,
        out_shape=jax.ShapeDtypeStruct((R, M), x.dtype),
        grid_spec=pltpu.PrefetchScalarGridSpec(
            num_scalar_prefetch=0,
            grid=(pl.cdiv(R, br), pl.cdiv(M, bm)),
            in_specs=[pl.BlockSpec((br, bm), lambda i, j: (i, j)),
                      pl.BlockSpec((br, 2), lambda i, j: (i, 0))],
            out_specs=pl.BlockSpec((br, bm), lambda i, j: (i, j)),
        ),
        compiler_params=pltpu.CompilerParams(
            dimension_semantics=("parallel", "parallel"),
            vmem_limit_bytes=vmem_limit),
    )(x2d, ss_r)

    y = y2d.reshape(N, C, H, W)

    if logdet is not None:
        dlogdet = jnp.sum(logs_c) * float(H * W)
        if reverse:
            dlogdet = -dlogdet
        logdet = logdet + dlogdet
    return y, logdet


# TODO(synk): offset_mask / logs_offset / bias_offset branches of forward()
# are not exercised (default None in the PyTorch module); they would simply
# fold into scale_c / shift_c in the wrapper before packing ss_r.


# ---------------------------------------------------------------------------
# Self-test
# ---------------------------------------------------------------------------
def _reference_init(x, scale):
    mean = jnp.mean(x, axis=(0, 2, 3), keepdims=True)
    bias = -mean
    var = jnp.mean((x + bias) ** 2, axis=(0, 2, 3), keepdims=True)
    logs = jnp.log(scale / (jnp.sqrt(var) + 1e-6))
    return bias, logs


def _check(x, scale=1.0, **blocks):
    N, C, H, W = x.shape
    logdet_in = jnp.zeros((N,), jnp.float32)

    bias, logs = actnorm_init(x, scale=scale, **blocks)
    y, logdet_out = actnorm_forward(x, bias, logs, logdet_in, reverse=False,
                                    **blocks)
    x_rec, _ = actnorm_forward(y, bias, logs, None, reverse=True, **blocks)
    jax.block_until_ready((bias, logs, y, logdet_out, x_rec))

    bias_ref, logs_ref = _reference_init(x, scale)
    y_ref = (x + bias_ref) * jnp.exp(logs_ref)
    logdet_ref = logdet_in + jnp.sum(logs_ref) * (H * W)

    assert jnp.allclose(bias.reshape(-1), bias_ref.reshape(-1),
                        atol=1e-5, rtol=1e-5), "bias mismatch"
    assert jnp.allclose(logs.reshape(-1), logs_ref.reshape(-1),
                        atol=1e-4, rtol=1e-5), "logs mismatch"
    assert jnp.allclose(y, y_ref, atol=1e-4, rtol=1e-4), "output mismatch"
    assert jnp.allclose(logdet_out, logdet_ref,
                        atol=2e-3, rtol=1e-5), "logdet mismatch"
    assert jnp.allclose(x_rec, x, atol=1e-4, rtol=1e-4), "round-trip mismatch"


if __name__ == "__main__":
    key = jax.random.PRNGKey(0)
    k1, k2 = jax.random.split(key)

    # 1) Clean shape (everything full-extent / cleanly tiled).
    x1 = jax.random.normal(k1, (2, 4, 16, 16), dtype=jnp.float32)
    _check(x1, scale=1.0)

    # 2) Ragged H*W (=196) and C (=3): full-extent blocks, NO padding copies.
    x2 = 0.5 * jax.random.normal(k2, (2, 3, 14, 14), dtype=jnp.float32) + 1.5
    _check(x2, scale=1.0)

    # 3) Same ragged shape with a forced small lane tile to exercise the
    #    cdiv grid + in-kernel mask / dropped-OOB-write path.
    _check(x2, scale=1.0, block_m=128)

    print("KERNEL_OK")
</pallas_src>

<mosaic_0001>
module attributes {stable_mosaic.version = 11 : i64} {
  func.func @_row_moments_kernel(%arg0: i32, %arg1: i32, %arg2: memref<8x256xf32, #tpu.memory_space<vmem>>, %arg3: memref<8x1xf32, #tpu.memory_space<vmem>>, %arg4: memref<8x1xf32, #tpu.memory_space<vmem>>, %arg5: memref<8x1xf32, #tpu.memory_space<vmem>>) attributes {dimension_semantics = [#tpu.dimension_semantics<parallel>, #tpu.dimension_semantics<arbitrary>], iteration_bounds = array<i64: 1, 1>, scalar_prefetch = 0 : i64, scratch_operands = 0 : i64, tpu.core_type = #tpu.core_type<tc>, window_params = [{transform_indices = @transform_0, window_bounds = array<i64: 8, 256>}, {transform_indices = @transform_1, window_bounds = array<i64: 8, 1>}, {transform_indices = @transform_2, window_bounds = array<i64: 8, 1>}, {transform_indices = @transform_3, window_bounds = array<i64: 8, 1>}]} {
    %c0_i32 = arith.constant 0 : i32
    %0 = arith.cmpi eq, %arg1, %c0_i32 : i32
    %1 = arith.extui %0 : i1 to i32
    %c0_i32_0 = arith.constant 0 : i32
    %2 = arith.cmpi ne, %1, %c0_i32_0 : i32
    scf.if %2 {
      %cst_13 = arith.constant 0.000000e+00 : f32
      %18 = vector.broadcast %cst_13 : f32 to vector<8x1xf32>
      %c0_14 = arith.constant 0 : index
      %c0_15 = arith.constant 0 : index
      %19 = vector.load %arg4[%c0_14, %c0_15] : memref<8x1xf32, #tpu.memory_space<vmem>>, vector<8x1xf32>
      tpu.vector_store %arg4[%c0_14, %c0_15], %18 {strides = array<i32>} : memref<8x1xf32, #tpu.memory_space<vmem>>, vector<8x1xf32>,
      %cst_16 = arith.constant 0.000000e+00 : f32
      %20 = vector.broadcast %cst_16 : f32 to vector<8x1xf32>
      %c0_17 = arith.constant 0 : index
      %c0_18 = arith.constant 0 : index
      %21 = vector.load %arg5[%c0_17, %c0_18] : memref<8x1xf32, #tpu.memory_space<vmem>>, vector<8x1xf32>
      tpu.vector_store %arg5[%c0_17, %c0_18], %20 {strides = array<i32>} : memref<8x1xf32, #tpu.memory_space<vmem>>, vector<8x1xf32>,
    } else {
    }
    %c0 = arith.constant 0 : index
    %c0_1 = arith.constant 0 : index
    %3 = vector.load %arg2[%c0, %c0_1] : memref<8x256xf32, #tpu.memory_space<vmem>>, vector<8x256xf32>
    %c0_2 = arith.constant 0 : index
    %c0_3 = arith.constant 0 : index
    %4 = vector.load %arg3[%c0_2, %c0_3] : memref<8x1xf32, #tpu.memory_space<vmem>>, vector<8x1xf32>
    %5 = vector.broadcast %4 : vector<8x1xf32> to vector<8x256xf32>
    %6 = arith.addf %3, %5 : vector<8x256xf32>
    %c0_4 = arith.constant 0 : index
    %c0_5 = arith.constant 0 : index
    %7 = vector.load %arg4[%c0_4, %c0_5] : memref<8x1xf32, #tpu.memory_space<vmem>>, vector<8x1xf32>
    %cst = arith.constant dense<0.000000e+00> : vector<8xf32>
    %8 = vector.multi_reduction <add>, %6, %cst [1] : vector<8x256xf32> to vector<8xf32>
    %9 = vector.shape_cast %8 : vector<8xf32> to vector<8x1xf32>
    %10 = arith.addf %7, %9 : vector<8x1xf32>
    %c0_6 = arith.constant 0 : index
    %c0_7 = arith.constant 0 : index
    %11 = vector.load %arg4[%c0_6, %c0_7] : memref<8x1xf32, #tpu.memory_space<vmem>>, vector<8x1xf32>
    tpu.vector_store %arg4[%c0_6, %c0_7], %10 {strides = array<i32>} : memref<8x1xf32, #tpu.memory_space<vmem>>, vector<8x1xf32>,
    %c0_8 = arith.constant 0 : index
    %c0_9 = arith.constant 0 : index
    %12 = vector.load %arg5[%c0_8, %c0_9] : memref<8x1xf32, #tpu.memory_space<vmem>>, vector<8x1xf32>
    %13 = arith.mulf %6, %6 : vector<8x256xf32>
    %cst_10 = arith.constant dense<0.000000e+00> : vector<8xf32>
    %14 = vector.multi_reduction <add>, %13, %cst_10 [1] : vector<8x256xf32> to vector<8xf32>
    %15 = vector.shape_cast %14 : vector<8xf32> to vector<8x1xf32>
    %16 = arith.addf %12, %15 : vector<8x1xf32>
    %c0_11 = arith.constant 0 : index
    %c0_12 = arith.constant 0 : index
    %17 = vector.load %arg5[%c0_11, %c0_12] : memref<8x1xf32, #tpu.memory_space<vmem>>, vector<8x1xf32>
    tpu.vector_store %arg5[%c0_11, %c0_12], %16 {strides = array<i32>} : memref<8x1xf32, #tpu.memory_space<vmem>>, vector<8x1xf32>,
    return
  }
  func.func @transform_0(%arg0: i32, %arg1: i32) -> (i32, i32) {
    %c0_i32 = arith.constant 0 : i32
    return %arg0, %arg1 : i32, i32
  }
  func.func @transform_1(%arg0: i32, %arg1: i32) -> (i32, i32) {
    %c0_i32 = arith.constant 0 : i32
    %c0_i32_0 = arith.constant 0 : i32
    return %arg0, %c0_i32 : i32, i32
  }
  func.func @transform_2(%arg0: i32, %arg1: i32) -> (i32, i32) {
    %c0_i32 = arith.constant 0 : i32
    %c0_i32_0 = arith.constant 0 : i32
    return %arg0, %c0_i32 : i32, i32
  }
  func.func @transform_3(%arg0: i32, %arg1: i32) -> (i32, i32) {
    %c0_i32 = arith.constant 0 : i32
    %c0_i32_0 = arith.constant 0 : i32
    return %arg0, %c0_i32 : i32, i32
  }
}

</mosaic_0001>

<bundles_post_ra>
// kernel: tpu_custom_call.1
= control target key start
LH: loop header
LB: loop body
LE: loop exit
PB: predicated region body
PF: predicated region fallthrough
CT: control target
= control target key end

     0   :  { %9 = vsyncpa [#allocation3], 0  ;;  %s92_s12 = smov [#allocation2]   ;;  %s143_s0 = inlined_call_operand.hbm [shape: f32[8,256], index: 0, kind: input, shape index: {}]   ;;  %s144_s1 = inlined_call_operand.vmem [shape: f32[8,1], index: 1, kind: input, shape index: {}]   ;;  %s145_s2 = inlined_call_operand.vmem [shape: f32[8,1], index: 2, kind: output, shape index: {0}]   ;;  %s146_s3 = inlined_call_operand.vmem [shape: f32[8,1], index: 3, kind: output, shape index: {1}]  }
   0x1   :  { %s16_s13 = sshll.u32 %s92_s12, 4  ;;  %s17_s13 = int_to_ptr.vmem [resolvable:$true] %s16_s13 }
   0x2   :  { %s78_s14 = scalar_lea.vmem %s17_s13, 256  ;;  %p83_p1 = scmp.lt.s32.totalorder %s17_s13, %s17_s13 }
   0x3   :  { %p79_p0 = scmp.ne.s32.totalorder %s17_s13, %s78_s14  ;;  %p84_p2 = scmp.lt.s32.totalorder %s78_s14, %s78_s14 }
   0x5   :  { %p85_p3 = por %p84_p2, %p83_p1 }
   0x7   :  { %p86_p4 = pnand %p85_p3, %p79_p0 }
   0x9   :  { %89 = shalt.err (!%p86_p4)
}
   0xa   :  { %19 = dma.hbm_to_vmem [thread:$0]  %s143_s0, 256, %s17_s13, [#allocation3]  }
   0xb   :  { %90 = dma.done.wait [#allocation3], 256  }
   0xc   :  { %91 = vsyncadd [#allocation3], 4294967040  ;;  %v93_v0 = vmov 0   ;;  %v34_v1 = vld [vmem:[%s144_s1] sm:$0xff]  ;;  %vm29_vm0 = vcmask 7168   ;;  %v94_v2 = vmov 0.0  }
   0xd   :  { %69 = vset.pattern.permute.xlu0 %v93_v0  ;;  %30 = vst.msk [vmem:[%s145_s2] sm:$0xff] %vm29_vm0, %v94_v2  ;;  %31 = vst.msk [vmem:[%s146_s3] sm:$0xff] %vm29_vm0, %v94_v2  ;;  %v32_v3 = vld [vmem:[#allocation2] sm:$0xff]  ;;  %v33_v4 = vld [vmem:[#allocation2 + $0x8] sm:$0xff] }
   0xe   :  { %37 = vperm.xlu0 %69, %v34_v1  }
  0x14   :  { %v42_v12 = vld [vmem:[%s145_s2] sm:$0xff] }
  0x15   :  { %v49_v14 = vld [vmem:[%s146_s3] sm:$0xff] }
  0x89   :  { %v38_v5 = vpop.permute.xlu0 %37 }
  0x8a   :  { %v40_v6 = vadd.f32 %v38_v5, %v32_v3  ;;  %v41_v7 = vadd.f32 %v38_v5, %v33_v4 }
  0x8c   :  { %v43_v8 = vadd.f32 %v41_v7, %v40_v6  ;;  %v50_v9 = vmul.f32 %v40_v6, %v40_v6  ;;  %v51_v10 = vmul.f32 %v41_v7, %v41_v7 }
  0x8e   :  { %44 = vadd.xlane.f32.xlu0 %v43_v8  ;;  %v52_v11 = vadd.f32 %v51_v10, %v50_v9 }
  0x90   :  { %53 = vadd.xlane.f32.xlu1 %v52_v11 }
 0x117   :  { %v45_v13 = vpop.xlane.xlu0 %44 }
 0x118   :  { %v46_v15 = vadd.f32 %v45_v13, %v42_v12 }
 0x119   :  { %v54_v16 = vpop.xlane.xlu1 %53 }
 0x11a   :  { %48 = vst.msk [vmem:[%s145_s2] sm:$0xff] %vm29_vm0, %v46_v15  ;;  %v55_v17 = vadd.f32 %v54_v16, %v49_v14 }
 0x11c   :  { %56 = vst.msk [vmem:[%s146_s3] sm:$0xff] %vm29_vm0, %v55_v17 }
 0x11d   :  { %65 = vsyncpa [#allocation3], 1 }

</bundles_post_ra>
